<compile_context>
chip_gen: v7x
topology: tpu7x:2x2x1
jax: 0.10.0
libtpu: 0.0.40
codegen_flags: <defaults>
</compile_context>

<pallas_src>
import jax
import jax.numpy as jnp
from jax import lax
from jax.experimental import pallas as pl
from jax.experimental.pallas import tpu as pltpu


# ---------------------------------------------------------------------------
# Kernels
# ---------------------------------------------------------------------------

def _base_kernel(x_ref, w_ref, b_ref, o_ref, acc_ref):
    """y = x @ W (+ b). K streamed over grid axis 2, f32 VMEM accumulator."""
    k = pl.program_id(2)

    @pl.when(k == 0)
    def _init():
        acc_ref[...] = jnp.zeros_like(acc_ref)

    # x: (tm, tk) bf16, w: (tk, tn) bf16 -> MXU matmul, f32 accumulate.
    acc_ref[...] += jnp.dot(x_ref[...], w_ref[...],
                            preferred_element_type=jnp.float32)

    @pl.when(k == pl.num_programs(2) - 1)
    def _store():
        o_ref[...] = (acc_ref[...] + b_ref[...]).astype(o_ref.dtype)


def _lora_kernel(x_ref, w_ref, b_ref, xa_ref, wb_ref, o_ref, acc_ref):
    """Base matmul over K tiles; rank-r LoRA update + bias added in epilogue."""
    k = pl.program_id(2)

    @pl.when(k == 0)
    def _init():
        acc_ref[...] = jnp.zeros_like(acc_ref)

    acc_ref[...] += jnp.dot(x_ref[...], w_ref[...],
                            preferred_element_type=jnp.float32)

    @pl.when(k == pl.num_programs(2) - 1)
    def _store():
        # xa = x @ W_a precomputed in the wrapper; alpha folded into wb.
        lora = jnp.dot(xa_ref[...], wb_ref[...],
                       preferred_element_type=jnp.float32)      # (tm, tn)
        o_ref[...] = (acc_ref[...] + lora + b_ref[...]).astype(o_ref.dtype)


def _base_kernel_1k(x_ref, w_ref, b_ref, o_ref):
    """Single K-step variant: no accumulator scratch / read-modify-write."""
    acc = jnp.dot(x_ref[...], w_ref[...], preferred_element_type=jnp.float32)
    o_ref[...] = (acc + b_ref[...]).astype(o_ref.dtype)


def _lora_kernel_1k(x_ref, w_ref, b_ref, xa_ref, wb_ref, o_ref):
    acc = jnp.dot(x_ref[...], w_ref[...], preferred_element_type=jnp.float32)
    acc += jnp.dot(xa_ref[...], wb_ref[...], preferred_element_type=jnp.float32)
    o_ref[...] = (acc + b_ref[...]).astype(o_ref.dtype)


# ---------------------------------------------------------------------------
# Tiling helpers
# ---------------------------------------------------------------------------

_TM_CAP = 512          # largest M tile we will ever use (worst case in budget)
_TK_CAP = 2048         # largest K tile
_TN_CAP = 1024         # largest N tile


def _round_up(v, m):
    return -(-v // m) * m


def _vmem_capacity_bytes():
    """Best-effort physical VMEM capacity; conservative (v7x) fallback."""
    try:
        info = pltpu.get_tpu_info()
        cap = getattr(info, "vmem_capacity_bytes", None)
        if cap:
            return int(cap)
    except Exception:
        pass
    try:
        kind = jax.devices()[0].device_kind.lower()
    except Exception:
        kind = ""
    if any(t in kind for t in ("v5 lite", "v5e", "v5litepod", "v6", "trillium")):
        return 128 * 1024 * 1024
    return 64 * 1024 * 1024          # v7x / unknown: be conservative.


def _pick_dim_tile(d_pad, max_tile, unit=128):
    """Tile for a padded dim (multiple of `unit`): full dim when it fits,
    otherwise the fewest-steps / least-padding multiple of `unit` (preferring
    256-multiples for the 256-wide v6e/v7x MXU)."""
    max_tile = max(unit, (max_tile // unit) * unit)
    if d_pad <= max_tile:
        return d_pad
    best_t, best_key = unit, None
    for t in range(unit, max_tile + 1, unit):
        steps = -(-d_pad // t)
        padded = steps * t
        key = (steps, padded, 0 if t % 256 == 0 else 1, -t)
        if best_key is None or key < best_key:
            best_key, best_t = key, t
    return best_t


def _split_tile(np_dim):
    """Largest 128-multiple divisor of np_dim that yields >= 2 tiles."""
    for t in range(np_dim - 128, 0, -128):
        if np_dim % t == 0:
            return t
    return 128


def _pick_nk_tiles(N, K, out_bytes=4, compute_bytes=2):
    """(tn, tk, Np, Kp) from N, K and the per-generation VMEM budget only
    (M-independent, so weight preparation can be done once and cached)."""
    cap = _vmem_capacity_bytes()
    budget = min(cap // 3, 40 * 1024 * 1024)       # ~21 MiB on 64-MiB parts
    Np = _round_up(N, 128)
    Kp = _round_up(K, 128)

    tk = _pick_dim_tile(Kp, _TK_CAP)

    # Remaining budget after the double-buffered x stream (worst-case tm).
    x_bytes = 2 * _TM_CAP * tk * compute_bytes
    per_tn = (2 * tk * compute_bytes          # double-buffered weight tile
              + _TM_CAP * 4                   # f32 accumulator
              + 2 * _TM_CAP * out_bytes)      # double-buffered output tile
    tn_max = max(128, (budget - x_bytes) // per_tn)
    tn = _pick_dim_tile(Np, min(tn_max, _TN_CAP))

    Kp = _round_up(Kp, tk)
    Np = _round_up(Np, tn)
    return int(tn), int(tk), int(Np), int(Kp)


def _pick_m_tile(M):
    Mp = _round_up(M, 16)
    if Mp <= _TM_CAP:
        return Mp, Mp
    tm = 256
    return tm, _round_up(Mp, tm)


def _pad2(a, r0, r1):
    p0, p1 = r0 - a.shape[0], r1 - a.shape[1]
    if p0 == 0 and p1 == 0:
        return a
    return jnp.pad(a, ((0, p0), (0, p1)))


def _lora_down(x, w_a_cdt, cdt):
    """xa = x @ W_a in compute dtype (tiny, rank-r; no f32 HIGHEST passes)."""
    return jnp.dot(x.astype(cdt), w_a_cdt)


# ---------------------------------------------------------------------------
# One-time weight preparation (hoisted out of the per-call hot path)
# ---------------------------------------------------------------------------

def prepare_lora_linear(w_lin, b_lin, w_a=None, w_b=None, alpha=0.5, *,
                        use_lora=True, merge_lora=False,
                        compute_dtype=jnp.bfloat16):
    """Pre-transpose/pad/cast the static parameters once.

    w_lin: (N, K) PyTorch nn.Linear layout; stored here transposed as (Kp, Np)
           bf16 so the kernel does a plain NN matmul (lane-dense weight block).
    """
    N, K = w_lin.shape
    f32 = jnp.float32
    tn, tk, Np, Kp = _pick_nk_tiles(N, K)

    if use_lora and merge_lora:
        # Inference fast path: fold LoRA directly in (K, N) layout -- produces
        # the merged weight without ever materializing / transposing a (K, N)
        # product separately.
        w_kn = w_lin.T.astype(f32) + alpha * (w_a.astype(f32) @ w_b.astype(f32))
        use_lora = False
    else:
        w_kn = w_lin.T.astype(f32)

    prepared = {
        "w_kn": _pad2(w_kn, Kp, Np).astype(compute_dtype),     # (Kp, Np) bf16
        "b": _pad2(b_lin.reshape(1, N).astype(f32), 1, Np),    # (1, Np) f32
        "N": N, "K": K, "Np": Np, "Kp": Kp, "tn": tn, "tk": tk,
        "use_lora": bool(use_lora), "compute_dtype": compute_dtype,
    }
    if use_lora:
        r = int(w_a.shape[1])
        prepared["rank"] = r
        prepared["w_a"] = w_a.astype(compute_dtype)                       # (K, r)
        # Fold alpha into the small (r, N) up-projection.
        prepared["wb"] = _pad2(alpha * w_b.astype(f32), r, Np).astype(compute_dtype)
    return prepared


# ---------------------------------------------------------------------------
# Hot-path apply
# ---------------------------------------------------------------------------

def lora_linear_apply(x, p, *, interpret=False):
    """y = x @ W^T + b (+ alpha * x @ W_a @ W_b) using prepared params `p`."""
    M, K = x.shape
    assert K == p["K"], "weight / input feature mismatch"
    out_dtype = x.dtype
    cdt = p["compute_dtype"]
    N, Np, Kp, tn, tk = p["N"], p["Np"], p["Kp"], p["tn"], p["tk"]

    tm, Mp = _pick_m_tile(M)
    # Keep >= 2 parallel (i, j) tiles so both v7x TensorCores get work; the
    # split picks an exact divisor of Np, so it adds no padding and is nearly
    # free on single-TensorCore chips.
    if (Mp // tm) * (Np // tn) < 2 and Np >= 256:
        tn = _split_tile(Np)
    grid = (Mp // tm, Np // tn, Kp // tk)
    k_steps = Kp // tk

    x_p = _pad2(x, Mp, Kp).astype(cdt)

    x_spec = pl.BlockSpec((tm, tk), lambda i, j, k: (i, k))
    w_spec = pl.BlockSpec((tk, tn), lambda i, j, k: (k, j))
    b_spec = pl.BlockSpec((1, tn), lambda i, j, k: (0, j))
    o_spec = pl.BlockSpec((tm, tn), lambda i, j, k: (i, j))

    vmem_cap = _vmem_capacity_bytes()
    common = dict(
        out_shape=jax.ShapeDtypeStruct((Mp, Np), out_dtype),
        compiler_params=pltpu.CompilerParams(
            dimension_semantics=("parallel", "parallel", "arbitrary"),
            vmem_limit_bytes=int(min(3 * vmem_cap // 4, 96 * 1024 * 1024))),
        interpret=interpret,
    )
    scratch = [] if k_steps == 1 else [pltpu.VMEM((tm, tn), jnp.float32)]

    if p["use_lora"]:
        r = p["rank"]
        # Tiny rank-r down-projection hoisted out of the kernel (otherwise it
        # would be recomputed for every N tile).
        xa_p = _pad2(_lora_down(x, p["w_a"], cdt), Mp, r)
        xa_spec = pl.BlockSpec((tm, r), lambda i, j, k: (i, 0))
        wb_spec = pl.BlockSpec((r, tn), lambda i, j, k: (0, j))
        kernel = _lora_kernel_1k if k_steps == 1 else _lora_kernel
        out = pl.pallas_call(
            kernel,
            grid_spec=pltpu.PrefetchScalarGridSpec(
                num_scalar_prefetch=0, grid=grid,
                in_specs=[x_spec, w_spec, b_spec, xa_spec, wb_spec],
                out_specs=o_spec,
                scratch_shapes=scratch),
            **common,
        )(x_p, p["w_kn"], p["b"], xa_p, p["wb"])
    else:
        kernel = _base_kernel_1k if k_steps == 1 else _base_kernel
        out = pl.pallas_call(
            kernel,
            grid_spec=pltpu.PrefetchScalarGridSpec(
                num_scalar_prefetch=0, grid=grid,
                in_specs=[x_spec, w_spec, b_spec],
                out_specs=o_spec,
                scratch_shapes=scratch),
            **common,
        )(x_p, p["w_kn"], p["b"])

    if (Mp, Np) != (M, N):
        out = out[:M, :N]
    return out


def lora_linear(x, w_lin, b_lin, w_a=None, w_b=None, alpha=0.5, *,
                use_lora=True, merge_lora=False,
                compute_dtype=jnp.bfloat16, interpret=False):
    """Convenience wrapper (prepare + apply). In real use, call
    prepare_lora_linear() once and reuse the prepared params across calls."""
    p = prepare_lora_linear(w_lin, b_lin, w_a, w_b, alpha,
                            use_lora=use_lora, merge_lora=merge_lora,
                            compute_dtype=compute_dtype)
    return lora_linear_apply(x, p, interpret=interpret)


# ---------------------------------------------------------------------------
# Reference (mirrors the kernel's bf16-input / f32-accumulate arithmetic)
# ---------------------------------------------------------------------------

def _ref_forward(x, w_lin, b_lin, w_a, w_b, alpha, use_lora, cdt):
    f32 = jnp.float32
    xq = x.astype(cdt).astype(f32)
    wq = w_lin.astype(cdt).astype(f32)
    y = jnp.dot(xq, wq.T, precision=lax.Precision.HIGHEST) + b_lin.astype(f32)
    if not use_lora:
        return y
    xa = _lora_down(x, w_a.astype(cdt), cdt).astype(f32)
    wbq = (alpha * w_b.astype(f32)).astype(cdt).astype(f32)
    return y + jnp.dot(xa, wbq, precision=lax.Precision.HIGHEST)


# ---------------------------------------------------------------------------
# Self-test
# ---------------------------------------------------------------------------

if __name__ == "__main__":
    key = jax.random.PRNGKey(0)

    def make_params(k, input_dim, output_dim, rank):
        kw, kb, ka, kbb = jax.random.split(k, 4)
        w_lin = jax.random.normal(kw, (output_dim, input_dim), jnp.float32) * 0.1
        b_lin = jax.random.normal(kb, (output_dim,), jnp.float32) * 0.1
        std_dev = 1.0 / jnp.sqrt(jnp.float32(rank))
        w_a = jax.random.normal(ka, (input_dim, rank), jnp.float32) * std_dev
        w_b = jax.random.normal(kbb, (rank, output_dim), jnp.float32)
        return w_lin, b_lin, w_a, w_b

    k1, k2, k3, kx1, kx2, kx3 = jax.random.split(key, 6)
    alpha = 0.5

    # --- Test 1: module-sized shapes (N=64 padded to one 128-lane tile) ------
    batch, input_dim, output_dim, rank = 8, 32, 64, 4
    x = jax.random.normal(kx1, (batch, input_dim), jnp.float32)
    w_lin, b_lin, w_a, w_b = make_params(k1, input_dim, output_dim, rank)

    prepared = prepare_lora_linear(w_lin, b_lin, w_a, w_b, alpha, use_lora=True)
    out = jax.block_until_ready(lora_linear_apply(x, prepared))
    ref = _ref_forward(x, w_lin, b_lin, w_a, w_b, alpha, True, jnp.bfloat16)
    assert out.shape == (batch, output_dim)
    assert jnp.allclose(out, ref, atol=1e-2, rtol=1e-2), "LoRA path mismatch"

    out_nl = jax.block_until_ready(lora_linear(x, w_lin, b_lin, use_lora=False))
    ref_nl = _ref_forward(x, w_lin, b_lin, None, None, alpha, False, jnp.bfloat16)
    assert jnp.allclose(out_nl, ref_nl, atol=2e-3, rtol=2e-3), "linear path mismatch"

    out_m = jax.block_until_ready(
        lora_linear(x, w_lin, b_lin, w_a, w_b, alpha,
                    use_lora=True, merge_lora=True))
    ref_f32 = x @ w_lin.T + b_lin + alpha * (x @ w_a @ w_b)
    assert jnp.allclose(out_m, ref_f32, atol=1e-1, rtol=1e-1), "merged path mismatch"

    # --- Test 2: K=640 / N=384 now run as full-K / split-N tiles, no padding --
    batch2, in2, out2, rank2 = 16, 640, 384, 8
    x2 = jax.random.normal(kx2, (batch2, in2), jnp.float32)
    w_lin2, b_lin2, w_a2, w_b2 = make_params(k2, in2, out2, rank2)
    o2 = jax.block_until_ready(
        lora_linear(x2, w_lin2, b_lin2, w_a2, w_b2, alpha, use_lora=True))
    r2 = _ref_forward(x2, w_lin2, b_lin2, w_a2, w_b2, alpha, True, jnp.bfloat16)
    assert o2.shape == (batch2, out2)
    assert jnp.allclose(o2, r2, atol=1e-2, rtol=1e-2), "single-K-step path mismatch"

    # --- Test 3: K=2560 -> 2 K steps, exercises the f32 accumulator path ------
    batch3, in3, out3, rank3 = 32, 2560, 256, 4
    x3 = jax.random.normal(kx3, (batch3, in3), jnp.float32)
    w_lin3, b_lin3, w_a3, w_b3 = make_params(k3, in3, out3, rank3)
    o3 = jax.block_until_ready(
        lora_linear(x3, w_lin3, b_lin3, w_a3, w_b3, alpha, use_lora=True))
    r3 = _ref_forward(x3, w_lin3, b_lin3, w_a3, w_b3, alpha, True, jnp.bfloat16)
    assert o3.shape == (batch3, out3)
    assert jnp.allclose(o3, r3, atol=1e-2, rtol=1e-2), "K-tiled accumulator mismatch"

    print("KERNEL_OK")
</pallas_src>

<mosaic_0001>
module attributes {stable_mosaic.version = 11 : i64} {
  func.func @_lora_kernel_1k(%arg0: i32, %arg1: i32, %arg2: i32, %arg3: memref<16x128xbf16, #tpu.memory_space<vmem>>, %arg4: memref<128x128xbf16, #tpu.memory_space<vmem>>, %arg5: memref<1x128xf32, #tpu.memory_space<vmem>>, %arg6: memref<16x4xbf16, #tpu.memory_space<vmem>>, %arg7: memref<4x128xbf16, #tpu.memory_space<vmem>>, %arg8: memref<16x128xf32, #tpu.memory_space<vmem>>) attributes {dimension_semantics = [#tpu.dimension_semantics<parallel>, #tpu.dimension_semantics<parallel>, #tpu.dimension_semantics<arbitrary>], iteration_bounds = array<i64: 1, 1, 1>, scalar_prefetch = 0 : i64, scratch_operands = 0 : i64, tpu.core_type = #tpu.core_type<tc>, window_params = [{transform_indices = @transform_0, window_bounds = array<i64: 16, 128>}, {transform_indices = @transform_1, window_bounds = array<i64: 128, 128>}, {transform_indices = @transform_2, window_bounds = array<i64: 1, 128>}, {transform_indices = @transform_3, window_bounds = array<i64: 16, 4>}, {transform_indices = @transform_4, window_bounds = array<i64: 4, 128>}, {transform_indices = @transform_5, window_bounds = array<i64: 16, 128>}]} {
    %c0 = arith.constant 0 : index
    %c0_0 = arith.constant 0 : index
    %0 = vector.load %arg3[%c0, %c0_0] : memref<16x128xbf16, #tpu.memory_space<vmem>>, vector<16x128xbf16>
    %c0_1 = arith.constant 0 : index
    %c0_2 = arith.constant 0 : index
    %1 = vector.load %arg4[%c0_1, %c0_2] : memref<128x128xbf16, #tpu.memory_space<vmem>>, vector<128x128xbf16>
    %cst = arith.constant dense<0.000000e+00> : vector<16x128xf32>
    %2 = tpu.matmul %0, %1, %cst {dimension_numbers = #tpu.dot_dimension_numbers<[1], [0], [0], [1], [0, 0, 1, 1], [], []>} : vector<16x128xbf16>, vector<128x128xbf16>, vector<16x128xf32> -> vector<16x128xf32>
    %c0_3 = arith.constant 0 : index
    %c0_4 = arith.constant 0 : index
    %3 = vector.load %arg6[%c0_3, %c0_4] : memref<16x4xbf16, #tpu.memory_space<vmem>>, vector<16x4xbf16>
    %c0_5 = arith.constant 0 : index
    %c0_6 = arith.constant 0 : index
    %4 = vector.load %arg7[%c0_5, %c0_6] : memref<4x128xbf16, #tpu.memory_space<vmem>>, vector<4x128xbf16>
    %cst_7 = arith.constant dense<0.000000e+00> : vector<16x128xf32>
    %5 = tpu.matmul %3, %4, %cst_7 {dimension_numbers = #tpu.dot_dimension_numbers<[1], [0], [0], [1], [0, 0, 1, 1], [], []>} : vector<16x4xbf16>, vector<4x128xbf16>, vector<16x128xf32> -> vector<16x128xf32>
    %6 = arith.addf %2, %5 : vector<16x128xf32>
    %c0_8 = arith.constant 0 : index
    %c0_9 = arith.constant 0 : index
    %7 = vector.load %arg5[%c0_8, %c0_9] : memref<1x128xf32, #tpu.memory_space<vmem>>, vector<1x128xf32>
    %8 = vector.broadcast %7 : vector<1x128xf32> to vector<16x128xf32>
    %9 = arith.addf %6, %8 : vector<16x128xf32>
    %c0_10 = arith.constant 0 : index
    %c0_11 = arith.constant 0 : index
    %10 = vector.load %arg8[%c0_10, %c0_11] : memref<16x128xf32, #tpu.memory_space<vmem>>, vector<16x128xf32>
    tpu.vector_store %arg8[%c0_10, %c0_11], %9 {strides = array<i32>} : memref<16x128xf32, #tpu.memory_space<vmem>>, vector<16x128xf32>,
    return
  }
  func.func @transform_0(%arg0: i32, %arg1: i32, %arg2: i32) -> (i32, i32) {
    %c0_i32 = arith.constant 0 : i32
    return %arg0, %arg2 : i32, i32
  }
  func.func @transform_1(%arg0: i32, %arg1: i32, %arg2: i32) -> (i32, i32) {
    %c0_i32 = arith.constant 0 : i32
    return %arg2, %arg1 : i32, i32
  }
  func.func @transform_2(%arg0: i32, %arg1: i32, %arg2: i32) -> (i32, i32) {
    %c0_i32 = arith.constant 0 : i32
    %c0_i32_0 = arith.constant 0 : i32
    return %c0_i32, %arg1 : i32, i32
  }
  func.func @transform_3(%arg0: i32, %arg1: i32, %arg2: i32) -> (i32, i32) {
    %c0_i32 = arith.constant 0 : i32
    %c0_i32_0 = arith.constant 0 : i32
    return %arg0, %c0_i32 : i32, i32
  }
  func.func @transform_4(%arg0: i32, %arg1: i32, %arg2: i32) -> (i32, i32) {
    %c0_i32 = arith.constant 0 : i32
    %c0_i32_0 = arith.constant 0 : i32
    return %c0_i32, %arg1 : i32, i32
  }
  func.func @transform_5(%arg0: i32, %arg1: i32, %arg2: i32) -> (i32, i32) {
    %c0_i32 = arith.constant 0 : i32
    return %arg0, %arg1 : i32, i32
  }
}

</mosaic_0001>

<bundles_post_ra>
// kernel: tpu_custom_call.1
= control target key start
LH: loop header
LB: loop body
LE: loop exit
PB: predicated region body
PF: predicated region fallthrough
CT: control target
= control target key end

     0   :  { %10 = vsyncpa [#allocation3], 0  ;;  %s423_s0 = inlined_call_operand.vmem [shape: bf16[16,128], index: 0, kind: input, shape index: {}]   ;;  %s424_s1 = inlined_call_operand.hbm [shape: bf16[128,128], index: 1, kind: input, shape index: {}]   ;;  %s425_s2 = inlined_call_operand.vmem [shape: f32[1,128], index: 2, kind: input, shape index: {}]   ;;  %s426_s3 = inlined_call_operand.vmem [shape: bf16[16,4], index: 3, kind: input, shape index: {}]   ;;  %s427_s4 = inlined_call_operand.vmem [shape: bf16[4,128], index: 4, kind: input, shape index: {}]   ;;  %s428_s5 = inlined_call_operand.hbm [shape: f32[16,128], index: 5, kind: output, shape index: {}]  }
   0x1   :  { %11 = vsyncpa [#allocation4], 0  ;;  %s349_s18 = smov [#allocation2]   ;;  %s301_s22 = scalar_lea.hbm %s424_s1, 1024 }
   0x2   :  { %s19_s19 = sshll.u32 %s349_s18, 4  ;;  %p302_p0 = scmp.ne.s32.totalorder %s424_s1, %s301_s22  ;;  %s20_s19 = int_to_ptr.vmem [resolvable:$true] %s19_s19 }
   0x3   :  { %p305_p1 = scmp.lt.u32.totalorder %s301_s22, %s424_s1 }
   0x5   :  { %p307_p2 = pnand %p305_p1, %p302_p0 }
   0x7   :  { %310 = shalt.err (!%p307_p2)
}
   0x8   :  { %s311_s27 = scalar_lea.vmem %s20_s19, 1024  ;;  %p316_p4 = scmp.lt.s32.totalorder %s20_s19, %s20_s19 }
   0x9   :  { %p312_p3 = scmp.ne.s32.totalorder %s20_s19, %s311_s27  ;;  %p317_p5 = scmp.lt.s32.totalorder %s311_s27, %s311_s27 }
   0xb   :  { %p318_p6 = por %p317_p5, %p316_p4 }
   0xd   :  { %p319_p7 = pnand %p318_p6, %p312_p3 }
   0xf   :  { %322 = shalt.err (!%p319_p7)
}
  0x10   :  { %s350_s28 = smov 64   ;;  %s351_s29 = smov 4  }
  0x11   :  { %25 = dma.hbm_to_vmem [thread:$0]  %s424_s1, 1024, %s20_s19, [#allocation3], %s350_s28, %s350_s28, %s351_s29  }
  0x12   :  { %345 = dma.done.wait [#allocation3], 1024  }
  0x13   :  { %346 = vsyncadd [#allocation3], 4294966272  ;;  %v352_v0 = vmov 0.0   ;;  %vm353_vm0 = vmmov 0   ;;  %v291_v1 = vld [vmem:[#allocation2] sm:$0xff]   ;;  %v292_v2 = vld [vmem:[#allocation2 + $0x8] sm:$0xff]  }
  0x14   :  { %263 = vmatprep.subr.bf16.mxu1 %v352_v0  ;;  %257 = vmatprep.subr.bf16.mxu0 %v352_v0  ;;  %vm66_vm1 = vcmask 1041408   ;;  %v293_v3 = vld [vmem:[#allocation2 + $0x10] sm:$0xff]   ;;  %v56_v4 = vld [vmem:[%s427_s4] sm:$0x3]  ;;  %vm62_vm2 = vcmask 31744   ;;  %v294_v7 = vld [vmem:[#allocation2 + $0x18] sm:$0xff]  }
  0x15   :  { %259 = vmatprep.mubr.msk.bf16.mxu0 %vm353_vm0, %v352_v0  ;;  %279 = vmatprep.mubr.msk.bf16.mxu1 %vm353_vm0, %v352_v0  ;;  %v68_v5 = vsel %vm66_vm1, %v56_v4, 0  ;;  %v298_v6 = vld [vmem:[%s426_s3] sm:$0xff]   ;;  %v296_v9 = vld [vmem:[#allocation2 + $0x28] sm:$0xff]   ;;  %v297_v10 = vld [vmem:[#allocation2 + $0x30] sm:$0xff]   ;;  %s354_s12 = smov [#allocation5]  }
  0x16   :  { %264 = vmatpush3.bf16.msra.mxu1 %v291_v1  ;;  %258 = vmatpush3.bf16.msra.mxu0 %v68_v5  ;;  %v295_v8 = vld [vmem:[#allocation2 + $0x20] sm:$0xff]   ;;  %v299_v11 = vld [vmem:[#allocation2 + $0x38] sm:$0xff]   ;;  %s222_s13 = sshll.u32 %s354_s12, 4  ;;  %s223_s13 = int_to_ptr.vmem [resolvable:$true] %s222_s13 }
  0x17   :  { %265 = vmatprep.subr.bf16.mxu1 %v352_v0  ;;  %v300_v12 = vld [vmem:[%s423_s0] sm:$0xff]   ;;  %s323_s0 = scalar_lea.vmem %s223_s13, 256  ;;  %p328_p9 = scmp.lt.s32.totalorder %s223_s13, %s223_s13 }
  0x18   :  { %v245_v18 = vld [vmem:[%s425_s2] ss:$0 sm:$0xff]  ;;  %p324_p8 = scmp.ne.s32.totalorder %s223_s13, %s323_s0  ;;  %p329_p10 = scmp.lt.s32.totalorder %s323_s0, %s323_s0 }
  0x19   :  { %260 = vmatmul.mubr.msk.bf16.vlgmr.msra.gmra.mrb[0].mxu0 %vm62_vm2, %v298_v6 }
  0x1a   :  { %266 = vmatpush3.bf16.msra.mxu1 %v292_v2  ;;  %p330_p11 = por %p329_p10, %p328_p9 }
  0x1b   :  { %267 = vmatprep.subr.bf16.mxu1 %v352_v0 }
  0x1c   :  { %p331_p12 = pnand %p330_p11, %p324_p8 }
  0x1e   :  { %268 = vmatpush3.bf16.msra.mxu1 %v293_v3 }
  0x1f   :  { %269 = vmatprep.subr.bf16.mxu1 %v352_v0 }
  0x22   :  { %270 = vmatpush3.bf16.msra.mxu1 %v294_v7 }
  0x23   :  { %271 = vmatprep.subr.bf16.mxu1 %v352_v0 }
  0x26   :  { %272 = vmatpush3.bf16.msra.mxu1 %v295_v8 }
  0x27   :  { %273 = vmatprep.subr.bf16.mxu1 %v352_v0 }
  0x2a   :  { %274 = vmatpush3.bf16.msra.mxu1 %v296_v9 }
  0x2b   :  { %275 = vmatprep.subr.bf16.mxu1 %v352_v0 }
  0x2e   :  { %276 = vmatpush3.bf16.msra.mxu1 %v297_v10 }
  0x2f   :  { %277 = vmatprep.subr.bf16.mxu1 %v352_v0 }
  0x32   :  { %278 = vmatpush3.bf16.msra.mxu1 %v299_v11 }
  0x35   :  { %280 = vmatmul.mubr.bf16.vlgmr.msra.gmra.mrb[0].mxu1 %v300_v12 }
  0xec   :  { %v104_v13 = vpop.f32.mrb[0].mxu0 }
  0xed   :  { %v261_v14 = vpop.f32.mrb[1].mxu0 }
  0xee   :  { %v107_v15 = vpop.f32.mrb[2].mxu0 }
  0xef   :  { %v262_v16 = vpop.f32.mrb[3].mxu0 }
 0x108   :  { %v199_v17 = vpop.f32.mrb[0].mxu1 }
 0x109   :  { %v200_v19 = vadd.f32 %v199_v17, %v104_v13  ;;  %v281_v20 = vpop.f32.mrb[1].mxu1 }
 0x10a   :  { %v202_v21 = vpop.f32.mrb[2].mxu1 }
 0x10b   :  { %v213_v22 = vadd.f32 %v245_v18, %v200_v19  ;;  %v203_v23 = vadd.f32 %v202_v21, %v107_v15  ;;  %v282_v24 = vpop.f32.mrb[3].mxu1 }
 0x10d   :  { %215 = vst [vmem:[#allocation5] sm:$0xff] %v213_v22  ;;  %v214_v25 = vadd.f32 %v245_v18, %v203_v23 }
 0x10f   :  { %216 = vst [vmem:[#allocation5 + $0x8] sm:$0xff] %v214_v25 }
 0x110   :  { %334 = shalt.err (!%p331_p12)
}
 0x111   :  { %s335_s15 = scalar_lea.hbm %s428_s5, 256 }
 0x112   :  { %p336_p13 = scmp.ne.s32.totalorder %s428_s5, %s335_s15  ;;  %p339_p0 = scmp.lt.u32.totalorder %s335_s15, %s428_s5 }
 0x114   :  { %p341_p1 = pnand %p339_p0, %p336_p13 }
 0x116   :  { %344 = shalt.err (!%p341_p1)
}
 0x117   :  { %s355_s20 = smov 128   ;;  %s356_s21 = smov 8  }
 0x118   :  { %228 = dma.vmem_to_hbm [thread:$0]  %s223_s13, 256, %s428_s5, [#allocation4], %s355_s20, %s355_s20, %s356_s21  }
 0x119   :  { %347 = dma.done.wait [#allocation4], 256  }
 0x11a   :  { %348 = vsyncadd [#allocation4], 4294967040 }
 0x11b   :  { %232 = vsyncpa [#allocation3], 1 }
 0x11c   :  { %233 = vsyncpa [#allocation4], 1 }

</bundles_post_ra>
